<compile_context>
chip_gen: v7x
topology: tpu7x:2x2x1
jax: 0.10.0
libtpu: 0.0.40
codegen_flags: <defaults>
</compile_context>

<pallas_src>
import jax
import jax.numpy as jnp
from jax import lax
from jax.experimental import pallas as pl
from jax.experimental.pallas import tpu as pltpu

LN_EPS = 1e-5  # torch.nn.LayerNorm default


def _layernorm_features_first(h, gamma, beta):
    # h: (d_model, TB), batch on lanes. Two-pass stats over the feature
    # (sublane) axis -> XLU sublane reductions, f32 throughout.
    mu = jnp.mean(h, axis=0, keepdims=True)           # (1, TB)
    d = h - mu
    var = jnp.mean(d * d, axis=0, keepdims=True)      # (1, TB)
    return d * lax.rsqrt(var + LN_EPS) * gamma + beta


def flops_mlp_kernel(
    x_ref,                              # (input_size, TB): batch on lanes
    wf_ref, bf_ref,                     # fused encoder+linear1: (d, in), (d, 1)
    g1_ref, bt1_ref,                    # LN 1 params (d, 1)
    w2_ref, b2_ref, g2_ref, bt2_ref,    # backbone block 2
    wd_ref, bd_ref,                     # decoder column (d, 1), bias (1, 1)
    o_ref,                              # (1, TB): lane-dense output row
):
    x = x_ref[...]

    # Fused encoder + backbone linear 1: (d, in) @ (in, TB) -> (d, TB).
    h = jnp.dot(wf_ref[...], x.astype(wf_ref.dtype),
                preferred_element_type=jnp.float32)
    h = h + bf_ref[...]
    h = _layernorm_features_first(h, g1_ref[...], bt1_ref[...])
    h = jnp.maximum(h, 0.0)

    # Backbone block 2: (d, d) @ (d, TB) -> (d, TB).
    h = jnp.dot(w2_ref[...], h.astype(w2_ref.dtype),
                preferred_element_type=jnp.float32)
    h = h + b2_ref[...]
    h = _layernorm_features_first(h, g2_ref[...], bt2_ref[...])
    h = jnp.maximum(h, 0.0)

    # Decoder (d_model -> 1): VPU multiply + sublane reduce; result is already
    # a lane-dense (1, TB) row, so the store is a plain unmasked vst.
    y = jnp.sum(h * wd_ref[...], axis=0, keepdims=True) + bd_ref[...]
    o_ref[...] = y.astype(o_ref.dtype)


def init_params(key, input_size, d_model, dtype=jnp.float32):
    """Deterministic synthetic init mimicking torch Linear/LayerNorm shapes."""
    ks = jax.random.split(key, 8)

    def linear(kw, kb, fan_in, fan_out):
        bound = 1.0 / jnp.sqrt(jnp.asarray(fan_in, jnp.float32))
        w = jax.random.uniform(kw, (fan_in, fan_out), dtype, -bound, bound)
        b = jax.random.uniform(kb, (1, fan_out), dtype, -bound, bound)
        return w, b

    we, be = linear(ks[0], ks[1], input_size, d_model)     # encoder
    w1, b1 = linear(ks[2], ks[3], d_model, d_model)        # backbone linear 1
    w2, b2 = linear(ks[4], ks[5], d_model, d_model)        # backbone linear 2
    wd, bd = linear(ks[6], ks[7], d_model, 1)              # decoder
    g1 = jnp.ones((1, d_model), dtype); bt1 = jnp.zeros((1, d_model), dtype)
    g2 = jnp.ones((1, d_model), dtype); bt2 = jnp.zeros((1, d_model), dtype)
    return dict(we=we, be=be, w1=w1, b1=b1, g1=g1, bt1=bt1,
                w2=w2, b2=b2, g2=g2, bt2=bt2, wd=wd, bd=bd)


def _round_up(n, m):
    return ((n + m - 1) // m) * m


def flops_forward(features, params, *, block_b=4096, matmul_dtype=jnp.bfloat16):
    """Pallas forward pass (batch-on-lanes layout).

    block_b: batch tile size (rounded to a multiple of 128; clamped so v7x
             gets >= 2 grid steps when there is enough work).
    matmul_dtype: MXU operand dtype for the two weight matrices (default
             bf16 on all generations; f32 accumulation and f32 LN/ReLU/bias).
             Pass None for an all-f32 path (tight match vs the f32 reference).
    """
    # Glue matching `if len(features.shape) == 1: features = features.unsqueeze(-1)`
    if features.ndim == 1:
        features = features[:, None]

    B, input_size = features.shape
    d_model = params["w1"].shape[1]
    f32 = jnp.float32

    # Algebraic fusion of encoder into backbone linear 1 (no nonlinearity in
    # between -> exact up to fp rounding). Fusion stays in f32 even when the
    # matmul operands are bf16.
    wf = params["we"].astype(f32) @ params["w1"].astype(f32)                     # (in, d)
    bf = params["be"].astype(f32) @ params["w1"].astype(f32) + params["b1"].astype(f32)

    # Feature-major parameter layout: (d, in)/(d, d) weights, (d, 1) columns.
    wf_t = wf.T
    w2_t = params["w2"].astype(f32).T
    bf_c = bf.reshape(d_model, 1)
    b2_c = params["b2"].astype(f32).reshape(d_model, 1)
    g1_c = params["g1"].astype(f32).reshape(d_model, 1)
    bt1_c = params["bt1"].astype(f32).reshape(d_model, 1)
    g2_c = params["g2"].astype(f32).reshape(d_model, 1)
    bt2_c = params["bt2"].astype(f32).reshape(d_model, 1)
    wd_c = params["wd"].astype(f32).reshape(d_model, 1)
    bd_c = params["bd"].astype(f32).reshape(1, 1)

    if matmul_dtype is not None:
        wf_t = wf_t.astype(matmul_dtype)
        w2_t = w2_t.astype(matmul_dtype)
        # x keeps its input dtype and is cast on the VPU inside the kernel;
        # a wrapper cast would add its own HBM pass over the dominant input.

    # Batch tiling: batch lives on lanes, so tiles are multiples of 128.
    Bp128 = _round_up(max(B, 1), 128)
    TB = min(_round_up(block_b, 128), Bp128)
    # v7x megacore: guarantee >= 2 grid steps when there is enough work so the
    # "parallel" batch axis spans both TensorCores (no-op on v5e/v6e).
    if Bp128 // TB < 2 and Bp128 >= 256:
        TB = _round_up(-(-Bp128 // 2), 128)
    Bp = _round_up(B, TB)
    grid = (Bp // TB,)

    # Batch-on-lanes staging: (B, in) -> (in, Bp). One extra XLA pass over x;
    # in exchange every DMA / VPU / MXU op and the output store are lane-dense.
    # TODO(synk): if callers can supply features already transposed (or in
    # bf16), drop this wrapper transpose/pad to remove the extra HBM pass.
    x_t = jnp.pad(features.T, ((0, 0), (0, Bp - B)))

    def batch_map(i):
        return (0, i)

    def fixed_map(i):
        return (0, 0)

    in_specs = [
        pl.BlockSpec((input_size, TB), batch_map),   # x tile (batch on lanes)
        pl.BlockSpec(wf_t.shape, fixed_map),
        pl.BlockSpec(bf_c.shape, fixed_map),
        pl.BlockSpec(g1_c.shape, fixed_map),
        pl.BlockSpec(bt1_c.shape, fixed_map),
        pl.BlockSpec(w2_t.shape, fixed_map),
        pl.BlockSpec(b2_c.shape, fixed_map),
        pl.BlockSpec(g2_c.shape, fixed_map),
        pl.BlockSpec(bt2_c.shape, fixed_map),
        pl.BlockSpec(wd_c.shape, fixed_map),
        pl.BlockSpec(bd_c.shape, fixed_map),
    ]
    out_spec = pl.BlockSpec((1, TB), batch_map)      # lane-dense output row

    # VMEM budget (double-buffered): x 2*8*TB*4 B + out 2*8*TB*4 B (sublane
    # padding) + tiny resident params + a few (d_model, TB) f32 temporaries
    # -> a few MiB even at TB=8192. 32 MiB scoped limit is safe on v5e
    # (16 MiB default), v6e (32 MiB default) and v7x (32 MiB default / 64 MiB
    # physical).
    out = pl.pallas_call(
        flops_mlp_kernel,
        out_shape=jax.ShapeDtypeStruct((1, Bp), features.dtype),
        grid=grid,
        in_specs=in_specs,
        out_specs=out_spec,
        compiler_params=pltpu.CompilerParams(
            dimension_semantics=("parallel",),
            vmem_limit_bytes=32 * 1024 * 1024),
    )(x_t, wf_t, bf_c, g1_c, bt1_c, w2_t, b2_c, g2_c, bt2_c, wd_c, bd_c)

    return out[0, :B][:, None]


def flops_reference(features, params):
    """Pure-JAX reference (un-fused, batch-major, f32) for sanity checking."""
    if features.ndim == 1:
        features = features[:, None]

    def ln(h, gamma, beta):
        mu = jnp.mean(h, axis=-1, keepdims=True)
        var = jnp.mean((h - mu) ** 2, axis=-1, keepdims=True)
        return (h - mu) * lax.rsqrt(var + LN_EPS) * gamma + beta

    h = features @ params["we"] + params["be"]
    h = h @ params["w1"] + params["b1"]
    h = jnp.maximum(ln(h, params["g1"], params["bt1"]), 0.0)
    h = h @ params["w2"] + params["b2"]
    h = jnp.maximum(ln(h, params["g2"], params["bt2"]), 0.0)
    return h @ params["wd"] + params["bd"]


if __name__ == "__main__":
    key = jax.random.PRNGKey(0)
    k_param, k_x1, k_x2 = jax.random.split(key, 3)

    input_size = 8
    d_model = 32
    batch = 8

    params = init_params(k_param, input_size, d_model)

    # 1) Small batch, default bf16 MXU operands (loose tolerance vs f32 ref).
    x = jax.random.normal(k_x1, (batch, input_size), jnp.float32)
    y_ref = flops_reference(x, params)
    y_bf16 = jax.block_until_ready(flops_forward(x, params))
    assert y_bf16.shape == (batch, 1), y_bf16.shape
    assert jnp.allclose(y_bf16, y_ref, atol=1e-1, rtol=1e-1), "bf16 mismatch vs reference"

    # 2) Same batch, all-f32 path (tight tolerance).
    y_f32 = jax.block_until_ready(flops_forward(x, params, matmul_dtype=None))
    assert jnp.allclose(y_f32, y_ref, atol=1e-4, rtol=1e-4), "f32 mismatch vs reference"

    # 3) Multi-tile: B=300 with block_b=128 -> lane padding + 3 grid steps.
    x2 = jax.random.normal(k_x2, (300, input_size), jnp.float32)
    y2_ref = flops_reference(x2, params)
    y2 = jax.block_until_ready(
        flops_forward(x2, params, block_b=128, matmul_dtype=None))
    assert y2.shape == (300, 1), y2.shape
    assert jnp.allclose(y2, y2_ref, atol=1e-4, rtol=1e-4), "tiled mismatch vs reference"

    # 4) Default tiling on the same batch exercises the >=2-step (v7x) clamp.
    y3 = jax.block_until_ready(flops_forward(x2, params))
    assert y3.shape == (300, 1), y3.shape
    assert jnp.allclose(y3, y2_ref, atol=1e-1, rtol=1e-1), "clamped-tile mismatch"

    print("KERNEL_OK")
</pallas_src>

<mosaic_0001>
module attributes {stable_mosaic.version = 11 : i64} {
  func.func @flops_mlp_kernel(%arg0: i32, %arg1: memref<8x128xf32, #tpu.memory_space<vmem>>, %arg2: memref<32x8xbf16, #tpu.memory_space<vmem>>, %arg3: memref<32x1xf32, #tpu.memory_space<vmem>>, %arg4: memref<32x1xf32, #tpu.memory_space<vmem>>, %arg5: memref<32x1xf32, #tpu.memory_space<vmem>>, %arg6: memref<32x32xbf16, #tpu.memory_space<vmem>>, %arg7: memref<32x1xf32, #tpu.memory_space<vmem>>, %arg8: memref<32x1xf32, #tpu.memory_space<vmem>>, %arg9: memref<32x1xf32, #tpu.memory_space<vmem>>, %arg10: memref<32x1xf32, #tpu.memory_space<vmem>>, %arg11: memref<1x1xf32, #tpu.memory_space<vmem>>, %arg12: memref<1x128xf32, #tpu.memory_space<vmem>>) attributes {dimension_semantics = [#tpu.dimension_semantics<parallel>], iteration_bounds = array<i64: 1>, scalar_prefetch = 0 : i64, scratch_operands = 0 : i64, tpu.core_type = #tpu.core_type<tc>, window_params = [{transform_indices = @transform_0, window_bounds = array<i64: 8, 128>}, {pipeline_mode = #tpu.pipeline_mode<synchronous>, transform_indices = @transform_1, window_bounds = array<i64: 32, 8>}, {pipeline_mode = #tpu.pipeline_mode<synchronous>, transform_indices = @transform_2, window_bounds = array<i64: 32, 1>}, {pipeline_mode = #tpu.pipeline_mode<synchronous>, transform_indices = @transform_3, window_bounds = array<i64: 32, 1>}, {pipeline_mode = #tpu.pipeline_mode<synchronous>, transform_indices = @transform_4, window_bounds = array<i64: 32, 1>}, {pipeline_mode = #tpu.pipeline_mode<synchronous>, transform_indices = @transform_5, window_bounds = array<i64: 32, 32>}, {pipeline_mode = #tpu.pipeline_mode<synchronous>, transform_indices = @transform_6, window_bounds = array<i64: 32, 1>}, {pipeline_mode = #tpu.pipeline_mode<synchronous>, transform_indices = @transform_7, window_bounds = array<i64: 32, 1>}, {pipeline_mode = #tpu.pipeline_mode<synchronous>, transform_indices = @transform_8, window_bounds = array<i64: 32, 1>}, {pipeline_mode = #tpu.pipeline_mode<synchronous>, transform_indices = @transform_9, window_bounds = array<i64: 32, 1>}, {pipeline_mode = #tpu.pipeline_mode<synchronous>, transform_indices = @transform_10, window_bounds = array<i64: 1, 1>}, {transform_indices = @transform_11, window_bounds = array<i64: 1, 128>}]} {
    %c0 = arith.constant 0 : index
    %c0_0 = arith.constant 0 : index
    %0 = vector.load %arg1[%c0, %c0_0] : memref<8x128xf32, #tpu.memory_space<vmem>>, vector<8x128xf32>
    %c0_1 = arith.constant 0 : index
    %c0_2 = arith.constant 0 : index
    %1 = vector.load %arg2[%c0_1, %c0_2] : memref<32x8xbf16, #tpu.memory_space<vmem>>, vector<32x8xbf16>
    %2 = arith.truncf %0 : vector<8x128xf32> to vector<8x128xbf16>
    %cst = arith.constant dense<0.000000e+00> : vector<32x128xf32>
    %3 = tpu.matmul %1, %2, %cst {dimension_numbers = #tpu.dot_dimension_numbers<[1], [0], [0], [1], [0, 0, 1, 1], [], []>} : vector<32x8xbf16>, vector<8x128xbf16>, vector<32x128xf32> -> vector<32x128xf32>
    %c0_3 = arith.constant 0 : index
    %c0_4 = arith.constant 0 : index
    %4 = vector.load %arg3[%c0_3, %c0_4] : memref<32x1xf32, #tpu.memory_space<vmem>>, vector<32x1xf32>
    %5 = vector.broadcast %4 : vector<32x1xf32> to vector<32x128xf32>
    %6 = arith.addf %3, %5 : vector<32x128xf32>
    %c0_5 = arith.constant 0 : index
    %c0_6 = arith.constant 0 : index
    %7 = vector.load %arg4[%c0_5, %c0_6] : memref<32x1xf32, #tpu.memory_space<vmem>>, vector<32x1xf32>
    %c0_7 = arith.constant 0 : index
    %c0_8 = arith.constant 0 : index
    %8 = vector.load %arg5[%c0_7, %c0_8] : memref<32x1xf32, #tpu.memory_space<vmem>>, vector<32x1xf32>
    %cst_9 = arith.constant dense<0.000000e+00> : vector<128xf32>
    %9 = vector.multi_reduction <add>, %6, %cst_9 [0] : vector<32x128xf32> to vector<128xf32>
    %10 = vector.shape_cast %9 : vector<128xf32> to vector<1x128xf32>
    %cst_10 = arith.constant 3.200000e+01 : f32
    %11 = vector.broadcast %cst_10 : f32 to vector<1x128xf32>
    %12 = arith.divf %10, %11 : vector<1x128xf32>
    %13 = vector.broadcast %12 : vector<1x128xf32> to vector<32x128xf32>
    %14 = arith.subf %6, %13 : vector<32x128xf32>
    %15 = arith.mulf %14, %14 : vector<32x128xf32>
    %cst_11 = arith.constant dense<0.000000e+00> : vector<128xf32>
    %16 = vector.multi_reduction <add>, %15, %cst_11 [0] : vector<32x128xf32> to vector<128xf32>
    %17 = vector.shape_cast %16 : vector<128xf32> to vector<1x128xf32>
    %cst_12 = arith.constant 3.200000e+01 : f32
    %18 = vector.broadcast %cst_12 : f32 to vector<1x128xf32>
    %19 = arith.divf %17, %18 : vector<1x128xf32>
    %cst_13 = arith.constant 9.99999974E-6 : f32
    %20 = vector.broadcast %cst_13 : f32 to vector<1x128xf32>
    %21 = arith.addf %19, %20 : vector<1x128xf32>
    %22 = math.rsqrt %21 : vector<1x128xf32>
    %23 = vector.broadcast %22 : vector<1x128xf32> to vector<32x128xf32>
    %24 = arith.mulf %14, %23 : vector<32x128xf32>
    %25 = vector.broadcast %7 : vector<32x1xf32> to vector<32x128xf32>
    %26 = arith.mulf %24, %25 : vector<32x128xf32>
    %27 = vector.broadcast %8 : vector<32x1xf32> to vector<32x128xf32>
    %28 = arith.addf %26, %27 : vector<32x128xf32>
    %cst_14 = arith.constant 0.000000e+00 : f32
    %29 = vector.broadcast %cst_14 : f32 to vector<32x128xf32>
    %30 = arith.maximumf %28, %29 : vector<32x128xf32>
    %c0_15 = arith.constant 0 : index
    %c0_16 = arith.constant 0 : index
    %31 = vector.load %arg6[%c0_15, %c0_16] : memref<32x32xbf16, #tpu.memory_space<vmem>>, vector<32x32xbf16>
    %32 = arith.truncf %30 : vector<32x128xf32> to vector<32x128xbf16>
    %cst_17 = arith.constant dense<0.000000e+00> : vector<32x128xf32>
    %33 = tpu.matmul %31, %32, %cst_17 {dimension_numbers = #tpu.dot_dimension_numbers<[1], [0], [0], [1], [0, 0, 1, 1], [], []>} : vector<32x32xbf16>, vector<32x128xbf16>, vector<32x128xf32> -> vector<32x128xf32>
    %c0_18 = arith.constant 0 : index
    %c0_19 = arith.constant 0 : index
    %34 = vector.load %arg7[%c0_18, %c0_19] : memref<32x1xf32, #tpu.memory_space<vmem>>, vector<32x1xf32>
    %35 = vector.broadcast %34 : vector<32x1xf32> to vector<32x128xf32>
    %36 = arith.addf %33, %35 : vector<32x128xf32>
    %c0_20 = arith.constant 0 : index
    %c0_21 = arith.constant 0 : index
    %37 = vector.load %arg8[%c0_20, %c0_21] : memref<32x1xf32, #tpu.memory_space<vmem>>, vector<32x1xf32>
    %c0_22 = arith.constant 0 : index
    %c0_23 = arith.constant 0 : index
    %38 = vector.load %arg9[%c0_22, %c0_23] : memref<32x1xf32, #tpu.memory_space<vmem>>, vector<32x1xf32>
    %cst_24 = arith.constant dense<0.000000e+00> : vector<128xf32>
    %39 = vector.multi_reduction <add>, %36, %cst_24 [0] : vector<32x128xf32> to vector<128xf32>
    %40 = vector.shape_cast %39 : vector<128xf32> to vector<1x128xf32>
    %cst_25 = arith.constant 3.200000e+01 : f32
    %41 = vector.broadcast %cst_25 : f32 to vector<1x128xf32>
    %42 = arith.divf %40, %41 : vector<1x128xf32>
    %43 = vector.broadcast %42 : vector<1x128xf32> to vector<32x128xf32>
    %44 = arith.subf %36, %43 : vector<32x128xf32>
    %45 = arith.mulf %44, %44 : vector<32x128xf32>
    %cst_26 = arith.constant dense<0.000000e+00> : vector<128xf32>
    %46 = vector.multi_reduction <add>, %45, %cst_26 [0] : vector<32x128xf32> to vector<128xf32>
    %47 = vector.shape_cast %46 : vector<128xf32> to vector<1x128xf32>
    %cst_27 = arith.constant 3.200000e+01 : f32
    %48 = vector.broadcast %cst_27 : f32 to vector<1x128xf32>
    %49 = arith.divf %47, %48 : vector<1x128xf32>
    %cst_28 = arith.constant 9.99999974E-6 : f32
    %50 = vector.broadcast %cst_28 : f32 to vector<1x128xf32>
    %51 = arith.addf %49, %50 : vector<1x128xf32>
    %52 = math.rsqrt %51 : vector<1x128xf32>
    %53 = vector.broadcast %52 : vector<1x128xf32> to vector<32x128xf32>
    %54 = arith.mulf %44, %53 : vector<32x128xf32>
    %55 = vector.broadcast %37 : vector<32x1xf32> to vector<32x128xf32>
    %56 = arith.mulf %54, %55 : vector<32x128xf32>
    %57 = vector.broadcast %38 : vector<32x1xf32> to vector<32x128xf32>
    %58 = arith.addf %56, %57 : vector<32x128xf32>
    %cst_29 = arith.constant 0.000000e+00 : f32
    %59 = vector.broadcast %cst_29 : f32 to vector<32x128xf32>
    %60 = arith.maximumf %58, %59 : vector<32x128xf32>
    %c0_30 = arith.constant 0 : index
    %c0_31 = arith.constant 0 : index
    %61 = vector.load %arg10[%c0_30, %c0_31] : memref<32x1xf32, #tpu.memory_space<vmem>>, vector<32x1xf32>
    %62 = vector.broadcast %61 : vector<32x1xf32> to vector<32x128xf32>
    %63 = arith.mulf %60, %62 : vector<32x128xf32>
    %cst_32 = arith.constant dense<0.000000e+00> : vector<128xf32>
    %64 = vector.multi_reduction <add>, %63, %cst_32 [0] : vector<32x128xf32> to vector<128xf32>
    %65 = vector.shape_cast %64 : vector<128xf32> to vector<1x128xf32>
    %c0_33 = arith.constant 0 : index
    %c0_34 = arith.constant 0 : index
    %66 = vector.load %arg11[%c0_33, %c0_34] : memref<1x1xf32, #tpu.memory_space<vmem>>, vector<1x1xf32>
    %67 = vector.broadcast %66 : vector<1x1xf32> to vector<1x128xf32>
    %68 = arith.addf %65, %67 : vector<1x128xf32>
    %c0_35 = arith.constant 0 : index
    %c0_36 = arith.constant 0 : index
    %69 = vector.load %arg12[%c0_35, %c0_36] : memref<1x128xf32, #tpu.memory_space<vmem>>, vector<1x128xf32>
    tpu.vector_store %arg12[%c0_35, %c0_36], %68 {strides = array<i32>} : memref<1x128xf32, #tpu.memory_space<vmem>>, vector<1x128xf32>,
    return
  }
  func.func @transform_0(%arg0: i32) -> (i32, i32) {
    %c0_i32 = arith.constant 0 : i32
    %c0_i32_0 = arith.constant 0 : i32
    return %c0_i32, %arg0 : i32, i32
  }
  func.func @transform_1(%arg0: i32) -> (i32, i32) {
    %c0_i32 = arith.constant 0 : i32
    %c0_i32_0 = arith.constant 0 : i32
    %c0_i32_1 = arith.constant 0 : i32
    return %c0_i32, %c0_i32_0 : i32, i32
  }
  func.func @transform_2(%arg0: i32) -> (i32, i32) {
    %c0_i32 = arith.constant 0 : i32
    %c0_i32_0 = arith.constant 0 : i32
    %c0_i32_1 = arith.constant 0 : i32
    return %c0_i32, %c0_i32_0 : i32, i32
  }
  func.func @transform_3(%arg0: i32) -> (i32, i32) {
    %c0_i32 = arith.constant 0 : i32
    %c0_i32_0 = arith.constant 0 : i32
    %c0_i32_1 = arith.constant 0 : i32
    return %c0_i32, %c0_i32_0 : i32, i32
  }
  func.func @transform_4(%arg0: i32) -> (i32, i32) {
    %c0_i32 = arith.constant 0 : i32
    %c0_i32_0 = arith.constant 0 : i32
    %c0_i32_1 = arith.constant 0 : i32
    return %c0_i32, %c0_i32_0 : i32, i32
  }
  func.func @transform_5(%arg0: i32) -> (i32, i32) {
    %c0_i32 = arith.constant 0 : i32
    %c0_i32_0 = arith.constant 0 : i32
    %c0_i32_1 = arith.constant 0 : i32
    return %c0_i32, %c0_i32_0 : i32, i32
  }
  func.func @transform_6(%arg0: i32) -> (i32, i32) {
    %c0_i32 = arith.constant 0 : i32
    %c0_i32_0 = arith.constant 0 : i32
    %c0_i32_1 = arith.constant 0 : i32
    return %c0_i32, %c0_i32_0 : i32, i32
  }
  func.func @transform_7(%arg0: i32) -> (i32, i32) {
    %c0_i32 = arith.constant 0 : i32
    %c0_i32_0 = arith.constant 0 : i32
    %c0_i32_1 = arith.constant 0 : i32
    return %c0_i32, %c0_i32_0 : i32, i32
  }
  func.func @transform_8(%arg0: i32) -> (i32, i32) {
    %c0_i32 = arith.constant 0 : i32
    %c0_i32_0 = arith.constant 0 : i32
    %c0_i32_1 = arith.constant 0 : i32
    return %c0_i32, %c0_i32_0 : i32, i32
  }
  func.func @transform_9(%arg0: i32) -> (i32, i32) {
    %c0_i32 = arith.constant 0 : i32
    %c0_i32_0 = arith.constant 0 : i32
    %c0_i32_1 = arith.constant 0 : i32
    return %c0_i32, %c0_i32_0 : i32, i32
  }
  func.func @transform_10(%arg0: i32) -> (i32, i32) {
    %c0_i32 = arith.constant 0 : i32
    %c0_i32_0 = arith.constant 0 : i32
    %c0_i32_1 = arith.constant 0 : i32
    return %c0_i32, %c0_i32_0 : i32, i32
  }
  func.func @transform_11(%arg0: i32) -> (i32, i32) {
    %c0_i32 = arith.constant 0 : i32
    %c0_i32_0 = arith.constant 0 : i32
    return %c0_i32, %arg0 : i32, i32
  }
}

</mosaic_0001>

<bundles_post_ra>
// kernel: tpu_custom_call.1
= control target key start
LH: loop header
LB: loop body
LE: loop exit
PB: predicated region body
PF: predicated region fallthrough
CT: control target
= control target key end

     0   :  { %s734_s0 = inlined_call_operand.vmem [shape: f32[8,128], index: 0, kind: input, shape index: {}]   ;;  %s735_s1 = inlined_call_operand.vmem [shape: bf16[32,8], index: 1, kind: input, shape index: {}]   ;;  %s736_s2 = inlined_call_operand.vmem [shape: f32[32,1], index: 2, kind: input, shape index: {}]   ;;  %s737_s3 = inlined_call_operand.vmem [shape: f32[32,1], index: 3, kind: input, shape index: {}]   ;;  %s738_s4 = inlined_call_operand.vmem [shape: f32[32,1], index: 4, kind: input, shape index: {}]   ;;  %s739_s5 = inlined_call_operand.vmem [shape: bf16[32,32], index: 5, kind: input, shape index: {}]   ;;  %s740_s6 = inlined_call_operand.vmem [shape: f32[32,1], index: 6, kind: input, shape index: {}]   ;;  %s741_s7 = inlined_call_operand.vmem [shape: f32[32,1], index: 7, kind: input, shape index: {}]   ;;  %s742_s8 = inlined_call_operand.vmem [shape: f32[32,1], index: 8, kind: input, shape index: {}]   ;;  %s743_s9 = inlined_call_operand.vmem [shape: f32[32,1], index: 9, kind: input, shape index: {}]   ;;  %s744_s10 = inlined_call_operand.<no memory space> [shape: f32[1,1], index: 10, kind: input, shape index: {}]   ;;  %s745_s11 = inlined_call_operand.hbm [shape: f32[1,128], index: 11, kind: output, shape index: {}]  }
   0x1   :  { %v16_v0 = vstv %s744_s10 }
   0x2   :  { %17 = vst [vmem:[#allocation2] sm:$0x1] %v16_v0 }
   0x3   :  { %v42_v1 = vld [vmem:[%s734_s0] sm:$0xff]  ;;  %vm89_vm0 = vcmask 1043456   ;;  %vm82_vm1 = vcmask 64512   ;;  %v525_v6 = vld [vmem:[%s735_s1 + $0x8] sm:$0xff]   ;;  %v50_v7 = vld [vmem:[%s736_s2 + $0x10] sm:$0xff]  ;;  %v556_v8 = vmov 0  }
   0x4   :  { %v47_v2 = vpack.c.bf16 %v42_v1, %v42_v1  ;;  %v524_v3 = vld [vmem:[%s735_s1] sm:$0xff]   ;;  %522 = vset.pattern.permute.xlu0 %v556_v8  ;;  %523 = vset.pattern.permute.xlu1 %v556_v8  ;;  %v49_v9 = vld [vmem:[%s736_s2 + $0x8] sm:$0xff]  ;;  %v51_v10 = vld [vmem:[%s736_s2 + $0x18] sm:$0xff] }
   0x5   :  { %v48_v4 = vld [vmem:[%s736_s2] sm:$0xff]  ;;  %507 = vmatprep.mubr.msk.bf16.mxu0 %vm82_vm1, %v524_v3  ;;  %64 = vperm.xlu1 %523, %v50_v7   ;;  %v143_v12 = vld [vmem:[%s737_s3 + $0x8] sm:$0xff] }
   0x6   :  { %519 = vmatprep.subr.msk.bf16.mxu0 %vm89_vm0, %v47_v2  ;;  %v91_v5 = vsel %vm89_vm0, %v47_v2, 0  ;;  %54 = vperm.xlu0 %522, %v48_v4   ;;  %v142_v11 = vld [vmem:[%s737_s3] sm:$0xff] }
   0x7   :  { %506 = vmatpush3.bf16.msra.mxu0 %v91_v5 }
   0x9   :  { %69 = vperm.xlu1 %523, %v51_v10  }
   0xa   :  { %508 = vmatmul.mubr.msk.bf16.vlgmr.msra.gmra.mrb[0].mxu0 %vm82_vm1, %v525_v6  ;;  %59 = vperm.xlu0 %522, %v49_v9  }
   0xe   :  { %187 = vperm.xlu0 %522, %v142_v11  }
   0xf   :  { %18 = vsyncpa [#allocation4], 0  ;;  %v146_v13 = vld [vmem:[%s738_s4] sm:$0xff]  ;;  %192 = vperm.xlu1 %523, %v143_v12   ;;  %v147_v14 = vld [vmem:[%s738_s4 + $0x8] sm:$0xff]  ;;  %vm277_vm2 = vcmask 261120  }
  0x10   :  { %v144_v15 = vld [vmem:[%s737_s3 + $0x10] sm:$0xff]  ;;  %v145_v16 = vld [vmem:[%s737_s3 + $0x18] sm:$0xff]  ;;  %v243_v19 = vld [vmem:[%s740_s6] sm:$0xff] }
  0x11   :  { %v148_v17 = vld [vmem:[%s738_s4 + $0x10] sm:$0xff]  ;;  %v149_v18 = vld [vmem:[%s738_s4 + $0x18] sm:$0xff]  ;;  %v244_v20 = vld [vmem:[%s740_s6 + $0x8] sm:$0xff] }
  0x12   :  { %211 = vperm.xlu0 %522, %v146_v13   ;;  %v245_v21 = vld [vmem:[%s740_s6 + $0x10] sm:$0xff]  ;;  %v246_v22 = vld [vmem:[%s740_s6 + $0x18] sm:$0xff]  ;;  %v333_v23 = vld [vmem:[%s741_s7] sm:$0xff] }
  0x13   :  { %216 = vperm.xlu1 %523, %v147_v14   ;;  %v334_v24 = vld [vmem:[%s741_s7 + $0x8] sm:$0xff]  ;;  %v335_v25 = vld [vmem:[%s741_s7 + $0x10] sm:$0xff]  ;;  %v337_v26 = vld [vmem:[%s742_s8] sm:$0xff] }
  0x14   :  { %v338_v27 = vld [vmem:[%s742_s8 + $0x8] sm:$0xff]  ;;  %v336_v28 = vld [vmem:[%s741_s7 + $0x18] sm:$0xff]  ;;  %v339_v29 = vld [vmem:[%s742_s8 + $0x10] sm:$0xff] }
  0x15   :  { %v340_v30 = vld [vmem:[%s742_s8 + $0x18] sm:$0xff]  ;;  %v427_v31 = vld [vmem:[%s743_s9] sm:$0xff]  ;;  %v428_v32 = vld [vmem:[%s743_s9 + $0x8] sm:$0xff] }
  0x16   :  { %197 = vperm.xlu0 %522, %v144_v15   ;;  %v429_v33 = vld [vmem:[%s743_s9 + $0x10] sm:$0xff]  ;;  %v430_v34 = vld [vmem:[%s743_s9 + $0x18] sm:$0xff]  ;;  %v464_v35 = vld [vmem:[#allocation2] sm:$0x1] }
  0x17   :  { %202 = vperm.xlu1 %523, %v145_v16   ;;  %v526_v36 = vld [vmem:[%s739_s5] sm:$0xff]  }
  0x18   :  { %515 = vmatprep.mubr.msk.bf16.mxu1 %vm277_vm2, %v526_v36 }
  0x1a   :  { %221 = vperm.xlu0 %522, %v148_v17  }
  0x1b   :  { %226 = vperm.xlu1 %523, %v149_v18  }
  0x1e   :  { %249 = vperm.xlu0 %522, %v243_v19  }
  0x1f   :  { %254 = vperm.xlu1 %523, %v244_v20  }
  0x22   :  { %259 = vperm.xlu0 %522, %v245_v21  }
  0x23   :  { %264 = vperm.xlu1 %523, %v246_v22  }
  0x26   :  { %377 = vperm.xlu0 %522, %v333_v23  }
  0x27   :  { %382 = vperm.xlu1 %523, %v334_v24  }
  0x2a   :  { %387 = vperm.xlu0 %522, %v335_v25  }
  0x2b   :  { %401 = vperm.xlu1 %523, %v337_v26  }
  0x2e   :  { %406 = vperm.xlu0 %522, %v338_v27  }
  0x2f   :  { %392 = vperm.xlu1 %523, %v336_v28  }
  0x32   :  { %411 = vperm.xlu0 %522, %v339_v29  }
  0x33   :  { %416 = vperm.xlu1 %523, %v340_v30  }
  0x36   :  { %433 = vperm.xlu0 %522, %v427_v31  }
  0x37   :  { %438 = vperm.xlu1 %523, %v428_v32  }
  0x3a   :  { %443 = vperm.xlu0 %522, %v429_v33  }
  0x3b   :  { %448 = vperm.xlu1 %523, %v430_v34  }
  0x3e   :  { %467 = vperm.xlu0 %522, %v464_v35  }
  0x84   :  { %v65_v39 = vpop.permute.xlu1 %64 }
  0x85   :  { %v55_v37 = vpop.permute.xlu0 %54 }
  0x88   :  { %v70_v48 = vpop.permute.xlu1 %69 }
  0x89   :  { %v60_v42 = vpop.permute.xlu0 %59 }
  0x8d   :  { %v188_v12 = vpop.permute.xlu0 %187 }
  0x8e   :  { %v193_v13 = vpop.permute.xlu1 %192 }
  0x91   :  { %v212_v16 = vpop.permute.xlu0 %211 }
  0x92   :  { %v217_v17 = vpop.permute.xlu1 %216 }
  0x95   :  { %v198_v18 = vpop.permute.xlu0 %197 }
  0x96   :  { %v203_v19 = vpop.permute.xlu1 %202 }
  0x99   :  { %v222_v29 = vpop.permute.xlu0 %221 }
  0x9a   :  { %v227_v30 = vpop.permute.xlu1 %226 }
  0xdd   :  { %v509_v38 = vpop.f32.mrb[0].mxu0 }
  0xde   :  { %v127_v40 = vpop.f32.mrb[1].mxu0  ;;  %v136_v46 = vadd.f32 %v509_v38, %v65_v39 }
  0xdf   :  { %v510_v41 = vpop.f32.mrb[2].mxu0  ;;  %v128_v44 = vadd.f32 %v127_v40, %v55_v37 }
  0xe0   :  { %v130_v43 = vpop.f32.mrb[3].mxu0  ;;  %v139_v49 = vadd.f32 %v510_v41, %v70_v48  ;;  %v527_v41 = vld [vmem:[%s739_s5 + $0x8] sm:$0xff]   ;;  %s557_s5 = smov [#allocation3]  }
  0xe1   :  { %v131_v45 = vadd.f32 %v130_v43, %v60_v42  ;;  %v250_v42 = vpop.permute.xlu0 %249  ;;  %s482_s30 = sshll.u32 %s557_s5, 4  ;;  %s483_s30 = int_to_ptr.vmem [resolvable:$true] %s482_s30 }
  0xe2   :  { %s532_s4 = scalar_lea.vmem %s483_s30, 16  ;;  %s536_s1 = scalar_lea.vmem %s483_s30, 32 }
  0xe3   :  { %v150_v47 = vadd.f32 %v131_v45, %v128_v44  ;;  %p533_p0 = scmp.ne.s32.totalorder %s483_s30, %s532_s4  ;;  %p537_p1 = scmp.lt.s32.totalorder %s483_s30, %s483_s30 }
  0xe4   :  { %p538_p2 = scmp.lt.s32.totalorder %s536_s1, %s532_s4 }
  0xe5   :  { %v151_v50 = vadd.f32 %v150_v47, %v136_v46 }
  0xe6   :  { %p539_p3 = por %p538_p2, %p537_p1 }
  0xe7   :  { %v152_v51 = vadd.f32 %v151_v50, %v139_v49  ;;  %v260_v50 = vpop.permute.xlu0 %259 }
  0xe8   :  { %p540_p4 = pnand %p539_p3, %p533_p0 }
  0xe9   :  { %v153_v52 = vrot.slane %v152_v51, 4 }
  0xeb   :  { %v154_v53 = vadd.f32 %v153_v52, %v152_v51 }
  0xed   :  { %v155_v54 = vrot.slane %v154_v53, 2 }
  0xef   :  { %v156_v55 = vadd.f32 %v155_v54, %v154_v53 }
  0xf1   :  { %v157_v56 = vrot.slane %v156_v55, 1 }
  0xf3   :  { %v158_v57 = vadd.f32 %v157_v56, %v156_v55 }
  0xf5   :  { %v160_v58 = vmul.f32 0.03125, %v158_v57 }
  0xf7   :  { %v161_v59 = vsub.f32 %v128_v44, %v160_v58  ;;  %v162_v60 = vsub.f32 %v131_v45, %v160_v58  ;;  %v163_v61 = vsub.f32 %v136_v46, %v160_v58  ;;  %v164_v62 = vsub.f32 %v139_v49, %v160_v58  ;;  %v255_v44 = vpop.permute.xlu1 %254 }
  0xf9   :  { %v165_v63 = vmul.f32 %v161_v59, %v161_v59  ;;  %v166_v0 = vmul.f32 %v162_v60, %v162_v60  ;;  %v167_v1 = vmul.f32 %v163_v61, %v163_v61  ;;  %v168_v3 = vmul.f32 %v164_v62, %v164_v62 }
  0xfb   :  { %v169_v2 = vadd.f32 %v166_v0, %v165_v63  ;;  %v265_v53 = vpop.permute.xlu1 %264 }
  0xfd   :  { %v170_v4 = vadd.f32 %v169_v2, %v167_v1 }
  0xff   :  { %v171_v5 = vadd.f32 %v170_v4, %v168_v3 }
 0x101   :  { %v172_v6 = vrot.slane %v171_v5, 4 }
 0x103   :  { %v173_v7 = vadd.f32 %v172_v6, %v171_v5 }
 0x105   :  { %v174_v8 = vrot.slane %v173_v7, 2 }
 0x107   :  { %v175_v9 = vadd.f32 %v174_v8, %v173_v7 }
 0x109   :  { %v176_v10 = vrot.slane %v175_v9, 1 }
 0x10b   :  { %v177_v11 = vadd.f32 %v176_v10, %v175_v9 }
 0x10d   :  { %v178_v14 = vmul.f32 0.03125, %v177_v11 }
 0x10f   :  { %v179_v15 = vadd.f32 1e-05, %v178_v14  ;;  %v378_v14 = vpop.permute.xlu0 %377 }
 0x111   :  { %528 = vrsqrt.f32 %v179_v15 }
 0x11b   :  { %v529_v20 = vpop.eup %528 }
 0x11c   :  { %v182_v21 = vmul.f32 %v529_v20, %v162_v60  ;;  %v181_v22 = vmul.f32 %v529_v20, %v161_v59  ;;  %v183_v23 = vmul.f32 %v529_v20, %v163_v61  ;;  %v184_v24 = vmul.f32 %v529_v20, %v164_v62 }
 0x11e   :  { %v205_v25 = vmul.f32 %v188_v12, %v181_v22  ;;  %v206_v26 = vmul.f32 %v193_v13, %v182_v21  ;;  %v207_v27 = vmul.f32 %v198_v18, %v183_v23  ;;  %v208_v28 = vmul.f32 %v203_v19, %v184_v24  ;;  %v388_v19 = vpop.permute.xlu0 %387 }
 0x120   :  { %v229_v31 = vadd.f32 %v212_v16, %v205_v25  ;;  %v230_v32 = vadd.f32 %v217_v17, %v206_v26  ;;  %v231_v33 = vadd.f32 %v222_v29, %v207_v27  ;;  %v232_v34 = vadd.f32 %v227_v30, %v208_v28  ;;  %v383_v16 = vpop.permute.xlu1 %382 }
 0x122   :  { %v233_v35 = vmax.f32 %v229_v31, 0.0  ;;  %v234_v36 = vmax.f32 %v230_v32, 0.0  ;;  %v235_v37 = vmax.f32 %v231_v33, 0.0  ;;  %v236_v38 = vmax.f32 %v232_v34, 0.0  ;;  %v407_v23 = vpop.permute.xlu0 %406 }
 0x124   :  { %v241_v39 = vpack.c.bf16 %v234_v36, %v233_v35  ;;  %v242_v40 = vpack.c.bf16 %v236_v38, %v235_v37  ;;  %v402_v21 = vpop.permute.xlu1 %401 }
 0x126   :  { %511 = vmatprep.subr.bf16.mxu1 %v241_v39  ;;  %v412_v25 = vpop.permute.xlu0 %411 }
 0x127   :  { %512 = vmatpush3.bf16.msra.mxu1 %v241_v39 }
 0x128   :  { %513 = vmatprep.subr.bf16.mxu1 %v242_v40  ;;  %v393_v24 = vpop.permute.xlu1 %392 }
 0x12a   :  { %v434_v36 = vpop.permute.xlu0 %433 }
 0x12b   :  { %514 = vmatpush3.bf16.msra.mxu1 %v242_v40 }
 0x12c   :  { %v417_v27 = vpop.permute.xlu1 %416 }
 0x12e   :  { %516 = vmatmul.mubr.msk.bf16.vlgmr.msra.gmra.mrb[0].mxu1 %vm277_vm2, %v527_v41 }
 0x130   :  { %v439_v41 = vpop.permute.xlu1 %438 }
 0x201   :  { %v517_v43 = vpop.f32.mrb[0].mxu1 }
 0x202   :  { %v318_v45 = vpop.f32.mrb[1].mxu1  ;;  %v327_v51 = vadd.f32 %v517_v43, %v260_v50 }
 0x203   :  { %v518_v46 = vpop.f32.mrb[2].mxu1  ;;  %v319_v48 = vadd.f32 %v318_v45, %v250_v42 }
 0x204   :  { %v321_v47 = vpop.f32.mrb[3].mxu1  ;;  %v330_v54 = vadd.f32 %v518_v46, %v265_v53 }
 0x205   :  { %v322_v49 = vadd.f32 %v321_v47, %v255_v44 }
 0x207   :  { %v341_v52 = vadd.f32 %v322_v49, %v319_v48 }
 0x209   :  { %v342_v55 = vadd.f32 %v341_v52, %v327_v51 }
 0x20b   :  { %v343_v56 = vadd.f32 %v342_v55, %v330_v54 }
 0x20d   :  { %v344_v57 = vrot.slane %v343_v56, 4 }
 0x20f   :  { %v345_v58 = vadd.f32 %v344_v57, %v343_v56 }
 0x211   :  { %v346_v59 = vrot.slane %v345_v58, 2 }
 0x213   :  { %v347_v60 = vadd.f32 %v346_v59, %v345_v58 }
 0x215   :  { %v348_v61 = vrot.slane %v347_v60, 1 }
 0x217   :  { %v349_v62 = vadd.f32 %v348_v61, %v347_v60 }
 0x219   :  { %v350_v63 = vmul.f32 0.03125, %v349_v62 }
 0x21b   :  { %v351_v0 = vsub.f32 %v319_v48, %v350_v63  ;;  %v352_v1 = vsub.f32 %v322_v49, %v350_v63  ;;  %v353_v2 = vsub.f32 %v327_v51, %v350_v63  ;;  %v354_v3 = vsub.f32 %v330_v54, %v350_v63  ;;  %v444_v48 = vpop.permute.xlu0 %443  ;;  %v449_v51 = vpop.permute.xlu1 %448 }
 0x21c   :  { %v470_v54 = vlaneseq }
 0x21d   :  { %v355_v4 = vmul.f32 %v351_v0, %v351_v0  ;;  %v356_v5 = vmul.f32 %v352_v1, %v352_v1  ;;  %v357_v6 = vmul.f32 %v353_v2, %v353_v2  ;;  %v358_v8 = vmul.f32 %v354_v3, %v354_v3 }
 0x21e   :  { %v471_v57 = vshrl.u32 %v470_v54, 7 }
 0x21f   :  { %v359_v7 = vadd.f32 %v356_v5, %v355_v4  ;;  %v468_v62 = vpop.permute.xlu0 %467 }
 0x220   :  { %v472_v60 = vsub.s32 0, %v471_v57 }
 0x221   :  { %v360_v9 = vadd.f32 %v359_v7, %v357_v6 }
 0x223   :  { %v361_v10 = vadd.f32 %v360_v9, %v358_v8 }
 0x225   :  { %v362_v11 = vrot.slane %v361_v10, 4 }
 0x227   :  { %v363_v12 = vadd.f32 %v362_v11, %v361_v10 }
 0x229   :  { %v364_v13 = vrot.slane %v363_v12, 2 }
 0x22b   :  { %v365_v15 = vadd.f32 %v364_v13, %v363_v12 }
 0x22d   :  { %v366_v17 = vrot.slane %v365_v15, 1 }
 0x22f   :  { %v367_v18 = vadd.f32 %v366_v17, %v365_v15 }
 0x231   :  { %v368_v20 = vmul.f32 0.03125, %v367_v18 }
 0x233   :  { %v369_v22 = vadd.f32 1e-05, %v368_v20 }
 0x235   :  { %530 = vrsqrt.f32 %v369_v22 }
 0x23f   :  { %v531_v26 = vpop.eup %530 }
 0x240   :  { %v371_v28 = vmul.f32 %v531_v26, %v351_v0  ;;  %v372_v29 = vmul.f32 %v531_v26, %v352_v1  ;;  %v373_v30 = vmul.f32 %v531_v26, %v353_v2  ;;  %v374_v31 = vmul.f32 %v531_v26, %v354_v3 }
 0x241   :  { %v473_v0 = vrot.slane %v468_v62, %v472_v60 }
 0x242   :  { %v395_v32 = vmul.f32 %v378_v14, %v371_v28  ;;  %v396_v33 = vmul.f32 %v383_v16, %v372_v29  ;;  %v397_v34 = vmul.f32 %v388_v19, %v373_v30  ;;  %v398_v35 = vmul.f32 %v393_v24, %v374_v31 }
 0x244   :  { %v419_v37 = vadd.f32 %v402_v21, %v395_v32  ;;  %v420_v38 = vadd.f32 %v407_v23, %v396_v33  ;;  %v421_v39 = vadd.f32 %v412_v25, %v397_v34  ;;  %v422_v40 = vadd.f32 %v417_v27, %v398_v35 }
 0x246   :  { %v423_v42 = vmax.f32 %v419_v37, 0.0  ;;  %v424_v43 = vmax.f32 %v420_v38, 0.0  ;;  %v425_v44 = vmax.f32 %v421_v39, 0.0  ;;  %v426_v47 = vmax.f32 %v422_v40, 0.0 }
 0x248   :  { %v451_v45 = vmul.f32 %v434_v36, %v423_v42  ;;  %v452_v46 = vmul.f32 %v439_v41, %v424_v43  ;;  %v453_v50 = vmul.f32 %v444_v48, %v425_v44  ;;  %v454_v52 = vmul.f32 %v449_v51, %v426_v47 }
 0x24a   :  { %v455_v49 = vadd.f32 %v452_v46, %v451_v45 }
 0x24c   :  { %v456_v53 = vadd.f32 %v455_v49, %v453_v50 }
 0x24e   :  { %v457_v55 = vadd.f32 %v456_v53, %v454_v52 }
 0x250   :  { %v458_v56 = vrot.slane %v457_v55, 4 }
 0x252   :  { %v459_v58 = vadd.f32 %v458_v56, %v457_v55 }
 0x254   :  { %v460_v59 = vrot.slane %v459_v58, 2 }
 0x256   :  { %v461_v61 = vadd.f32 %v460_v59, %v459_v58 }
 0x258   :  { %v462_v63 = vrot.slane %v461_v61, 1 }
 0x25a   :  { %v463_v1 = vadd.f32 %v462_v63, %v461_v61 }
 0x25c   :  { %v474_v2 = vadd.f32 %v473_v0, %v463_v1 }
 0x25e   :  { %475 = vst [vmem:[#allocation3] sm:$0x1] %v474_v2 }
 0x25f   :  { %543 = shalt.err (!%p540_p4)
}
 0x260   :  { %s544_s14 = scalar_lea.hbm %s745_s11, 16 }
 0x261   :  { %p545_p5 = scmp.ne.s32.totalorder %s745_s11, %s544_s14  ;;  %p548_p6 = scmp.lt.u32.totalorder %s544_s14, %s745_s11 }
 0x263   :  { %p550_p7 = pnand %p548_p6, %p545_p5 }
 0x265   :  { %553 = shalt.err (!%p550_p7)
}
 0x266   :  { %485 = dma.vmem_to_hbm [thread:$0]  %s483_s30, 16, %s745_s11, [#allocation4]  }
 0x267   :  { %554 = dma.done.wait [#allocation4], 16  }
 0x268   :  { %555 = vsyncadd [#allocation4], 4294967280 }
 0x269   :  { %489 = vsyncpa [#allocation4], 1 }

</bundles_post_ra>
